<compile_context>
chip_gen: v7x
topology: tpu7x:2x2x1
jax: 0.10.0
libtpu: 0.0.40
codegen_flags: <defaults>
</compile_context>

<pallas_src>
import functools
import math

import jax
import jax.numpy as jnp
from jax.experimental import pallas as pl
from jax.experimental.pallas import tpu as pltpu

# Explicit scoped-VMEM budget: comfortably above the per-step working set, below
# v7x's 64 MiB physical VMEM (v5e/v6e have 128 MiB, so this is safe everywhere).
_VMEM_LIMIT = 48 * 1024 * 1024


# ----------------------------------------------------------------------------
# Shared math helpers (used inside kernels AND in the pure-JAX reference so the
# correctness comparison is formula-identical).
# ----------------------------------------------------------------------------
def _layer_norm(x, gamma, beta, eps):
    mu = jnp.mean(x, axis=-1, keepdims=True)
    xc = x - mu
    var = jnp.mean(xc * xc, axis=-1, keepdims=True)
    return xc * jax.lax.rsqrt(var + eps) * gamma + beta


def _gelu_tanh(x):
    # TODO(synk): torch nn.GELU() is erf-exact; the tanh approximation is used here (and
    # in the reference) because erf has no guaranteed Mosaic lowering.
    c = math.sqrt(2.0 / math.pi)
    return 0.5 * x * (1.0 + jnp.tanh(c * (x + 0.044715 * x * x * x)))


# ----------------------------------------------------------------------------
# RoPE tables (matches torch get_rotary_embedding: repeat_interleave(2) tables)
# ----------------------------------------------------------------------------
def get_rotary_embedding(seq_len, head_dim, base=10000.0):
    inv_freq = 1.0 / (base ** (jnp.arange(0, head_dim, 2, dtype=jnp.float32) / head_dim))
    positions = jnp.arange(seq_len, dtype=jnp.float32)
    sinusoid_inp = jnp.einsum('i,j->ij', positions, inv_freq)      # (S, D/2)
    sin = jnp.repeat(jnp.sin(sinusoid_inp), 2, axis=-1)            # (S, D)
    cos = jnp.repeat(jnp.cos(sinusoid_inp), 2, axis=-1)            # (S, D)
    return cos, sin


def _rotate_half_matrix(num_heads, head_dim):
    # q @ R == torch rotate_half(q) (chunk into halves, cat([-x2, x1])), per head.
    half = head_dim // 2
    r = jnp.zeros((head_dim, head_dim), jnp.float32)
    r = r.at[half:, :half].set(-jnp.eye(half, dtype=jnp.float32))  # -> -x2 in first half
    r = r.at[:half, half:].set(jnp.eye(half, dtype=jnp.float32))   # ->  x1 in second half
    return jnp.kron(jnp.eye(num_heads, dtype=jnp.float32), r)       # block-diag over heads


# ----------------------------------------------------------------------------
# Kernel 0: plain LayerNorm (used for the Embeddings layer norm, eps=1e-12)
# ----------------------------------------------------------------------------
def _layer_norm_kernel(x_ref, g_ref, b_ref, o_ref, *, eps):
    o_ref[0] = _layer_norm(x_ref[0], g_ref[...], b_ref[...], eps).astype(o_ref.dtype)


def _layer_norm_call(x, gamma, beta, *, eps, tq):
    B, S, E = x.shape
    const = lambda b, i: (0, 0)
    grid_spec = pltpu.PrefetchScalarGridSpec(
        num_scalar_prefetch=0,
        grid=(B, S // tq),
        in_specs=[
            pl.BlockSpec((1, tq, E), lambda b, i: (b, i, 0)),
            pl.BlockSpec((1, E), const),
            pl.BlockSpec((1, E), const),
        ],
        out_specs=pl.BlockSpec((1, tq, E), lambda b, i: (b, i, 0)),
    )
    return pl.pallas_call(
        functools.partial(_layer_norm_kernel, eps=eps),
        out_shape=jax.ShapeDtypeStruct((B, S, E), jnp.float32),
        grid_spec=grid_spec,
        compiler_params=pltpu.CompilerParams(
            dimension_semantics=("parallel", "parallel"),
            vmem_limit_bytes=_VMEM_LIMIT),
    )(x, gamma, beta)


# ----------------------------------------------------------------------------
# Kernel 1: LN1 + fused lane-dense QKV projection + RoPE (+ 1/sqrt(D) folded into q)
# ----------------------------------------------------------------------------
def _ln_qkv_rope_kernel(x_ref, g1_ref, b1_ref, wqkv_ref, bqkv_ref,
                        cos_ref, sin_ref, rot_ref, q_ref, k_ref, v_ref,
                        *, embed_dim, head_dim, compute_dtype):
    x = x_ref[0]                                                   # (tq, E) f32
    xn = _layer_norm(x, g1_ref[...], b1_ref[...], 1e-5)

    # One lane-dense (tq, E) @ (E, 3E) MXU matmul instead of 3*H narrow ones.
    qkv = jnp.dot(xn.astype(compute_dtype), wqkv_ref[...].astype(compute_dtype),
                  preferred_element_type=jnp.float32) + bqkv_ref[...]

    E = embed_dim
    q = qkv[:, :E]
    k = qkv[:, E:2 * E]
    v = qkv[:, 2 * E:]

    cos = cos_ref[...]                                             # (tq, E) head-tiled
    sin = sin_ref[...]
    rot = rot_ref[...].astype(compute_dtype)                       # (E, E) +/-1 block-diag

    # rotate_half as an MXU matmul (pushes the rotation off the VPU/load-store slots).
    q_rot = jnp.dot(q.astype(compute_dtype), rot, preferred_element_type=jnp.float32)
    k_rot = jnp.dot(k.astype(compute_dtype), rot, preferred_element_type=jnp.float32)

    scale = 1.0 / math.sqrt(head_dim)                              # folded into q
    q_ref[0] = ((q * cos + q_rot * sin) * scale).astype(q_ref.dtype)
    k_ref[0] = (k * cos + k_rot * sin).astype(k_ref.dtype)
    v_ref[0] = v.astype(v_ref.dtype)


def _ln_qkv_rope_call(x, g1, b1, w_qkv, b_qkv, cos_full, sin_full, rot,
                      *, head_dim, compute_dtype, tq):
    B, S, E = x.shape
    const = lambda b, i: (0, 0)
    out_sds = jax.ShapeDtypeStruct((B, S, E), compute_dtype)
    row_spec = pl.BlockSpec((1, tq, E), lambda b, i: (b, i, 0))
    # NOTE: weight/bias/cos/sin blocks have constant index_maps so they are DMA'd once;
    # pl.Buffered(1) could also drop their double-buffer but is left default for portability.
    grid_spec = pltpu.PrefetchScalarGridSpec(
        num_scalar_prefetch=0,
        grid=(B, S // tq),
        in_specs=[
            row_spec,                                              # x
            pl.BlockSpec((1, E), const),                           # ln1 gamma
            pl.BlockSpec((1, E), const),                           # ln1 beta
            pl.BlockSpec((E, 3 * E), const),                       # W_qkv
            pl.BlockSpec((1, 3 * E), const),                       # b_qkv
            pl.BlockSpec((tq, E), lambda b, i: (i, 0)),            # cos (head-tiled)
            pl.BlockSpec((tq, E), lambda b, i: (i, 0)),            # sin (head-tiled)
            pl.BlockSpec((E, E), const),                           # rotate_half matrix
        ],
        out_specs=(row_spec, row_spec, row_spec),
    )
    return pl.pallas_call(
        functools.partial(_ln_qkv_rope_kernel, embed_dim=E, head_dim=head_dim,
                          compute_dtype=compute_dtype),
        out_shape=(out_sds, out_sds, out_sds),
        grid_spec=grid_spec,
        compiler_params=pltpu.CompilerParams(
            dimension_semantics=("parallel", "parallel"),
            vmem_limit_bytes=_VMEM_LIMIT),
    )(x, g1, b1, w_qkv, b_qkv, cos_full, sin_full, rot)


# ----------------------------------------------------------------------------
# Kernel 2: flash-style multi-head attention (online softmax over a KV grid axis)
# ----------------------------------------------------------------------------
def _flash_attn_kernel(q_ref, k_ref, v_ref, o_ref, m_sc, l_sc, acc_sc,
                       *, num_heads, head_dim, compute_dtype):
    kv = pl.program_id(2)

    @pl.when(kv == 0)
    def _():
        m_sc[...] = jnp.full(m_sc.shape, -jnp.inf, m_sc.dtype)
        l_sc[...] = jnp.zeros(l_sc.shape, l_sc.dtype)
        acc_sc[...] = jnp.zeros(acc_sc.shape, acc_sc.dtype)

    q = q_ref[0].astype(compute_dtype)                             # (H, tq, D)
    k = k_ref[0].astype(compute_dtype)                             # (H, tk, D)
    v = v_ref[0].astype(compute_dtype)                             # (H, tk, D)

    # (H, tq, tk) scores for this KV tile; 1/sqrt(D) already folded into q.
    s = jnp.einsum('hqd,hkd->hqk', q, k, preferred_element_type=jnp.float32)

    m_prev = m_sc[...]
    m_new = jnp.maximum(m_prev, jnp.max(s, axis=-1, keepdims=True))
    alpha = jnp.exp(m_prev - m_new)
    p = jnp.exp(s - m_new)
    l_sc[...] = alpha * l_sc[...] + jnp.sum(p, axis=-1, keepdims=True)
    acc_sc[...] = alpha * acc_sc[...] + jnp.einsum(
        'hqk,hkd->hqd', p.astype(compute_dtype), v,
        preferred_element_type=jnp.float32)
    m_sc[...] = m_new

    @pl.when(kv == pl.num_programs(2) - 1)
    def _():
        inv_l = pl.reciprocal(l_sc[...], approx=True)              # (H, tq, 1) on the EUP
        # Write a lane-dense (tq, H*D) output slab (heads concatenated along lanes).
        for h in range(num_heads):
            o_ref[0, :, h * head_dim:(h + 1) * head_dim] = (
                acc_sc[h] * inv_l[h]).astype(o_ref.dtype)


def _flash_attention_call(qh, kh, vh, *, compute_dtype, tq, tk):
    B, H, S, D = qh.shape
    E = H * D
    grid_spec = pltpu.PrefetchScalarGridSpec(
        num_scalar_prefetch=0,
        grid=(B, S // tq, S // tk),
        in_specs=[
            pl.BlockSpec((1, H, tq, D), lambda b, qi, ki: (b, 0, qi, 0)),
            pl.BlockSpec((1, H, tk, D), lambda b, qi, ki: (b, 0, ki, 0)),
            pl.BlockSpec((1, H, tk, D), lambda b, qi, ki: (b, 0, ki, 0)),
        ],
        out_specs=pl.BlockSpec((1, tq, E), lambda b, qi, ki: (b, qi, 0)),
        scratch_shapes=[
            pltpu.VMEM((H, tq, 1), jnp.float32),                   # running max
            pltpu.VMEM((H, tq, 1), jnp.float32),                   # running denom
            pltpu.VMEM((H, tq, D), jnp.float32),                   # output accumulator
        ],
    )
    return pl.pallas_call(
        functools.partial(_flash_attn_kernel, num_heads=H, head_dim=D,
                          compute_dtype=compute_dtype),
        out_shape=jax.ShapeDtypeStruct((B, S, E), jnp.float32),
        grid_spec=grid_spec,
        compiler_params=pltpu.CompilerParams(
            dimension_semantics=("parallel", "parallel", "arbitrary"),
            vmem_limit_bytes=_VMEM_LIMIT),
    )(qh, kh, vh)


# ----------------------------------------------------------------------------
# Kernel 3: attention out-projection + residual + LN2 + FFN (GELU) + residual
# ----------------------------------------------------------------------------
def _attn_out_ffn_kernel(x_ref, attn_ref, wo_ref, bo_ref, g2_ref, b2_ref,
                         w1_ref, c1_ref, w2_ref, c2_ref, o_ref, *, compute_dtype):
    x = x_ref[0]                                                   # (tq, E) residual, f32
    a = attn_ref[0].astype(jnp.float32)

    proj = jnp.dot(a.astype(compute_dtype), wo_ref[...].astype(compute_dtype),
                   preferred_element_type=jnp.float32) + bo_ref[...]
    x1 = x + proj                                                  # residual 1

    xn = _layer_norm(x1, g2_ref[...], b2_ref[...], 1e-5)
    h = jnp.dot(xn.astype(compute_dtype), w1_ref[...].astype(compute_dtype),
                preferred_element_type=jnp.float32) + c1_ref[...]
    h = _gelu_tanh(h)
    y = jnp.dot(h.astype(compute_dtype), w2_ref[...].astype(compute_dtype),
                preferred_element_type=jnp.float32) + c2_ref[...]
    o_ref[0] = (x1 + y).astype(o_ref.dtype)                        # residual 2


def _attn_out_ffn_call(x, attn, lp, *, compute_dtype, tq):
    B, S, E = x.shape
    Fi = lp['w1'].shape[1]
    const = lambda b, i: (0, 0)
    row_spec = pl.BlockSpec((1, tq, E), lambda b, i: (b, i, 0))
    grid_spec = pltpu.PrefetchScalarGridSpec(
        num_scalar_prefetch=0,
        grid=(B, S // tq),
        in_specs=[
            row_spec,                                              # x (residual stream)
            row_spec,                                              # attention output
            pl.BlockSpec((E, E), const),                           # W_o
            pl.BlockSpec((1, E), const),                           # b_o
            pl.BlockSpec((1, E), const),                           # ln2 gamma
            pl.BlockSpec((1, E), const),                           # ln2 beta
            pl.BlockSpec((E, Fi), const),                          # W1
            pl.BlockSpec((1, Fi), const),                          # b1
            pl.BlockSpec((Fi, E), const),                          # W2
            pl.BlockSpec((1, E), const),                           # b2
        ],
        out_specs=row_spec,
    )
    return pl.pallas_call(
        functools.partial(_attn_out_ffn_kernel, compute_dtype=compute_dtype),
        out_shape=jax.ShapeDtypeStruct((B, S, E), jnp.float32),
        grid_spec=grid_spec,
        compiler_params=pltpu.CompilerParams(
            dimension_semantics=("parallel", "parallel"),
            vmem_limit_bytes=_VMEM_LIMIT),
    )(x, attn, lp['w_o'], lp['b_o'], lp['ln2_g'], lp['ln2_b'],
      lp['w1'], lp['b1'], lp['w2'], lp['b2'])


# ----------------------------------------------------------------------------
# Full forward (Embeddings + N encoder layers)
# ----------------------------------------------------------------------------
def _choose_tile(s, target):
    if s <= target:
        return s
    t = math.gcd(s, target)
    return t if (t % 8 == 0) else s


def _encoder_layer_forward(x, lp, cos_full, sin_full, rot,
                           *, num_heads, head_dim, compute_dtype, tq, tk):
    B, S, E = x.shape
    q, k, v = _ln_qkv_rope_call(x, lp['ln1_g'], lp['ln1_b'], lp['w_qkv'], lp['b_qkv'],
                                cos_full, sin_full, rot,
                                head_dim=head_dim, compute_dtype=compute_dtype, tq=tq)
    # Wrapper-side layout plumbing: (B, S, H*D) -> (B, H, S, D) so the flash kernel gets
    # head-batched tiles without any in-kernel transpose.
    def to_heads(t):
        return jnp.transpose(t.reshape(B, S, num_heads, head_dim), (0, 2, 1, 3))

    attn = _flash_attention_call(to_heads(q), to_heads(k), to_heads(v),
                                 compute_dtype=compute_dtype, tq=tq, tk=tk)
    return _attn_out_ffn_call(x, attn, lp, compute_dtype=compute_dtype, tq=tq)


def transformer_encoder_forward(input_ids, params, *, num_heads, head_dim,
                                compute_dtype=jnp.float32):
    # TODO(synk): token-embedding gather is a data-dependent row lookup; left to XLA.
    emb = jnp.take(params['emb_table'], input_ids, axis=0)         # (B, S, E) f32
    B, S, E = emb.shape
    tq = _choose_tile(S, 256)
    tk = _choose_tile(S, 512)

    # Embeddings: LayerNorm(eps=1e-12); dropout is identity in eval mode.
    x = _layer_norm_call(emb, params['emb_ln_g'], params['emb_ln_b'], eps=1e-12, tq=tq)

    cos, sin = get_rotary_embedding(S, head_dim)
    cos_full = jnp.tile(cos, (1, num_heads))                       # (S, H*D)
    sin_full = jnp.tile(sin, (1, num_heads))
    rot = _rotate_half_matrix(num_heads, head_dim)                 # (E, E)

    for lp in params['layers']:
        x = _encoder_layer_forward(x, lp, cos_full, sin_full, rot,
                                   num_heads=num_heads, head_dim=head_dim,
                                   compute_dtype=compute_dtype, tq=tq, tk=tk)
    return x


# ----------------------------------------------------------------------------
# Pure-JAX reference mirroring the PyTorch module (per-head loops, chunk rotate_half,
# plain softmax, unfused projections)
# ----------------------------------------------------------------------------
def _rotate_half_ref(t):
    t1, t2 = jnp.split(t, 2, axis=-1)
    return jnp.concatenate([-t2, t1], axis=-1)


def reference_encoder(input_ids, params, *, num_heads, head_dim):
    x = params['emb_table'][input_ids]
    x = _layer_norm(x, params['emb_ln_g'], params['emb_ln_b'], 1e-12)
    B, S, E = x.shape
    cos, sin = get_rotary_embedding(S, head_dim)
    for lp in params['layers']:
        h = _layer_norm(x, lp['ln1_g'], lp['ln1_b'], 1e-5)
        head_outs = []
        for n in range(num_heads):
            qs = slice(n * head_dim, (n + 1) * head_dim)
            ks = slice(E + n * head_dim, E + (n + 1) * head_dim)
            vs = slice(2 * E + n * head_dim, 2 * E + (n + 1) * head_dim)
            q = h @ lp['w_qkv'][:, qs] + lp['b_qkv'][:, qs]
            k = h @ lp['w_qkv'][:, ks] + lp['b_qkv'][:, ks]
            v = h @ lp['w_qkv'][:, vs] + lp['b_qkv'][:, vs]
            q = q * cos[None] + _rotate_half_ref(q) * sin[None]
            k = k * cos[None] + _rotate_half_ref(k) * sin[None]
            scores = jnp.einsum('bqd,bkd->bqk', q, k) / math.sqrt(head_dim)
            w = jax.nn.softmax(scores, axis=-1)
            head_outs.append(jnp.einsum('bqk,bkd->bqd', w, v))
        attn = jnp.concatenate(head_outs, axis=-1) @ lp['w_o'] + lp['b_o']
        x = x + attn
        h2 = _layer_norm(x, lp['ln2_g'], lp['ln2_b'], 1e-5)
        ff = _gelu_tanh(h2 @ lp['w1'] + lp['b1']) @ lp['w2'] + lp['b2']
        x = x + ff
    return x


# ----------------------------------------------------------------------------
if __name__ == "__main__":
    B, S = 2, 8           # batch, sequence
    E, H = 32, 4          # hidden size, attention heads
    D = E // H            # head dim
    FF = 64               # intermediate (FFN) size
    V = 64                # vocab size
    L = 2                 # number of encoder layers

    key = jax.random.PRNGKey(0)
    keys = iter(jax.random.split(key, 64))

    def uni(shape, bound):
        return jax.random.uniform(next(keys), shape, jnp.float32, -bound, bound)

    params = {
        'emb_table': jax.random.normal(next(keys), (V, E), jnp.float32),
        'emb_ln_g': 1.0 + 0.1 * jax.random.normal(next(keys), (1, E), jnp.float32),
        'emb_ln_b': 0.1 * jax.random.normal(next(keys), (1, E), jnp.float32),
        'layers': [],
    }
    bound_e = 1.0 / math.sqrt(E)
    bound_f = 1.0 / math.sqrt(FF)
    for _ in range(L):
        params['layers'].append({
            'ln1_g': 1.0 + 0.1 * jax.random.normal(next(keys), (1, E), jnp.float32),
            'ln1_b': 0.1 * jax.random.normal(next(keys), (1, E), jnp.float32),
            'w_qkv': uni((E, 3 * E), bound_e),   # [q | k | v], head n at cols n*D:(n+1)*D
            'b_qkv': uni((1, 3 * E), bound_e),
            'w_o': uni((E, E), bound_e),
            'b_o': uni((1, E), bound_e),
            'ln2_g': 1.0 + 0.1 * jax.random.normal(next(keys), (1, E), jnp.float32),
            'ln2_b': 0.1 * jax.random.normal(next(keys), (1, E), jnp.float32),
            'w1': uni((E, FF), bound_e),
            'b1': uni((1, FF), bound_e),
            'w2': uni((FF, E), bound_f),
            'b2': uni((1, E), bound_f),
        })

    input_ids = jax.random.randint(next(keys), (B, S), 0, V)

    # f32 run (tight-ish check vs the pure-JAX reference)
    out_f32 = transformer_encoder_forward(input_ids, params, num_heads=H, head_dim=D,
                                          compute_dtype=jnp.float32)
    out_f32 = jax.block_until_ready(out_f32)

    ref = reference_encoder(input_ids, params, num_heads=H, head_dim=D)
    ref = jax.block_until_ready(ref)

    assert out_f32.shape == (B, S, E)
    assert bool(jnp.all(jnp.isfinite(out_f32)))
    assert jnp.allclose(out_f32, ref, atol=3e-2, rtol=3e-2), \
        "Pallas f32 output mismatch vs JAX reference"

    # bf16-MXU run (operands bf16, f32 accumulation / elementwise) — looser sanity check
    out_bf16 = transformer_encoder_forward(input_ids, params, num_heads=H, head_dim=D,
                                           compute_dtype=jnp.bfloat16)
    out_bf16 = jax.block_until_ready(out_bf16)
    assert jnp.allclose(out_bf16, ref, atol=2e-1, rtol=2e-1), \
        "Pallas bf16 output mismatch vs JAX reference"

    print("KERNEL_OK")
</pallas_src>

<mosaic_0001>
module attributes {stable_mosaic.version = 11 : i64} {
  func.func @_layer_norm_kernel(%arg0: i32, %arg1: i32, %arg2: memref<1x8x32xf32, #tpu.memory_space<vmem>>, %arg3: memref<1x32xf32, #tpu.memory_space<vmem>>, %arg4: memref<1x32xf32, #tpu.memory_space<vmem>>, %arg5: memref<1x8x32xf32, #tpu.memory_space<vmem>>) attributes {dimension_semantics = [#tpu.dimension_semantics<parallel>, #tpu.dimension_semantics<parallel>], iteration_bounds = array<i64: 2, 1>, scalar_prefetch = 0 : i64, scratch_operands = 0 : i64, tpu.core_type = #tpu.core_type<tc>, window_params = [{transform_indices = @transform_0, window_bounds = array<i64: 1, 8, 32>}, {pipeline_mode = #tpu.pipeline_mode<synchronous>, transform_indices = @transform_1, window_bounds = array<i64: 1, 32>}, {pipeline_mode = #tpu.pipeline_mode<synchronous>, transform_indices = @transform_2, window_bounds = array<i64: 1, 32>}, {transform_indices = @transform_3, window_bounds = array<i64: 1, 8, 32>}]} {
    %c0 = arith.constant 0 : index
    %c0_0 = arith.constant 0 : index
    %c0_1 = arith.constant 0 : index
    %0 = vector.load %arg2[%c0, %c0_0, %c0_1] : memref<1x8x32xf32, #tpu.memory_space<vmem>>, vector<1x8x32xf32>
    %1 = vector.shape_cast %0 : vector<1x8x32xf32> to vector<8x32xf32>
    %c0_2 = arith.constant 0 : index
    %c0_3 = arith.constant 0 : index
    %2 = vector.load %arg3[%c0_2, %c0_3] : memref<1x32xf32, #tpu.memory_space<vmem>>, vector<1x32xf32>
    %c0_4 = arith.constant 0 : index
    %c0_5 = arith.constant 0 : index
    %3 = vector.load %arg4[%c0_4, %c0_5] : memref<1x32xf32, #tpu.memory_space<vmem>>, vector<1x32xf32>
    %cst = arith.constant dense<0.000000e+00> : vector<8xf32>
    %4 = vector.multi_reduction <add>, %1, %cst [1] : vector<8x32xf32> to vector<8xf32>
    %5 = vector.shape_cast %4 : vector<8xf32> to vector<8x1xf32>
    %cst_6 = arith.constant 3.200000e+01 : f32
    %6 = vector.broadcast %cst_6 : f32 to vector<8x1xf32>
    %7 = arith.divf %5, %6 : vector<8x1xf32>
    %8 = vector.broadcast %7 : vector<8x1xf32> to vector<8x32xf32>
    %9 = arith.subf %1, %8 : vector<8x32xf32>
    %10 = arith.mulf %9, %9 : vector<8x32xf32>
    %cst_7 = arith.constant dense<0.000000e+00> : vector<8xf32>
    %11 = vector.multi_reduction <add>, %10, %cst_7 [1] : vector<8x32xf32> to vector<8xf32>
    %12 = vector.shape_cast %11 : vector<8xf32> to vector<8x1xf32>
    %cst_8 = arith.constant 3.200000e+01 : f32
    %13 = vector.broadcast %cst_8 : f32 to vector<8x1xf32>
    %14 = arith.divf %12, %13 : vector<8x1xf32>
    %cst_9 = arith.constant 9.99999996E-13 : f32
    %15 = vector.broadcast %cst_9 : f32 to vector<8x1xf32>
    %16 = arith.addf %14, %15 : vector<8x1xf32>
    %17 = math.rsqrt %16 : vector<8x1xf32>
    %18 = vector.broadcast %17 : vector<8x1xf32> to vector<8x32xf32>
    %19 = arith.mulf %9, %18 : vector<8x32xf32>
    %20 = vector.broadcast %2 : vector<1x32xf32> to vector<8x32xf32>
    %21 = arith.mulf %19, %20 : vector<8x32xf32>
    %22 = vector.broadcast %3 : vector<1x32xf32> to vector<8x32xf32>
    %23 = arith.addf %21, %22 : vector<8x32xf32>
    %c0_10 = arith.constant 0 : index
    %c0_11 = arith.constant 0 : index
    %c0_12 = arith.constant 0 : index
    %24 = vector.load %arg5[%c0_10, %c0_11, %c0_12] : memref<1x8x32xf32, #tpu.memory_space<vmem>>, vector<1x8x32xf32>
    %25 = vector.shape_cast %24 : vector<1x8x32xf32> to vector<8x32xf32>
    %26 = vector.shape_cast %23 : vector<8x32xf32> to vector<1x8x32xf32>
    tpu.vector_store %arg5[%c0_10, %c0_11, %c0_12], %26 {strides = array<i32>} : memref<1x8x32xf32, #tpu.memory_space<vmem>>, vector<1x8x32xf32>,
    return
  }
  func.func @transform_0(%arg0: i32, %arg1: i32) -> (i32, i32, i32) {
    %c0_i32 = arith.constant 0 : i32
    %c0_i32_0 = arith.constant 0 : i32
    return %arg0, %arg1, %c0_i32 : i32, i32, i32
  }
  func.func @transform_1(%arg0: i32, %arg1: i32) -> (i32, i32) {
    %c0_i32 = arith.constant 0 : i32
    %c0_i32_0 = arith.constant 0 : i32
    %c0_i32_1 = arith.constant 0 : i32
    return %c0_i32, %c0_i32_0 : i32, i32
  }
  func.func @transform_2(%arg0: i32, %arg1: i32) -> (i32, i32) {
    %c0_i32 = arith.constant 0 : i32
    %c0_i32_0 = arith.constant 0 : i32
    %c0_i32_1 = arith.constant 0 : i32
    return %c0_i32, %c0_i32_0 : i32, i32
  }
  func.func @transform_3(%arg0: i32, %arg1: i32) -> (i32, i32, i32) {
    %c0_i32 = arith.constant 0 : i32
    %c0_i32_0 = arith.constant 0 : i32
    return %arg0, %arg1, %c0_i32 : i32, i32, i32
  }
}

</mosaic_0001>

<bundles_post_ra>
// kernel: tpu_custom_call.1
= control target key start
LH: loop header
LB: loop body
LE: loop exit
PB: predicated region body
PF: predicated region fallthrough
CT: control target
= control target key end

     0   :  { %8 = vsyncpa [#allocation3], 0  ;;  %s727_s0 = inlined_call_operand.hbm [shape: f32[2,8,32], index: 0, kind: input, shape index: {}]   ;;  %s728_s1 = inlined_call_operand.vmem [shape: f32[1,32], index: 1, kind: input, shape index: {}]   ;;  %s729_s2 = inlined_call_operand.vmem [shape: f32[1,32], index: 2, kind: input, shape index: {}]   ;;  %s730_s3 = inlined_call_operand.hbm [shape: f32[2,8,32], index: 3, kind: output, shape index: {}]  }
   0x1   :  { %10 = vsyncpa [#allocation3 + $0x1], 0 }
   0x2   :  { %11 = vsyncpa [#allocation4], 0 }
   0x3   :  { %13 = vsyncpa [#allocation4 + $0x1], 0  ;;  %s546_s12 = smov 0   ;;  %s548_s13 = smov 0  }
   0x4   :  { %s550_s14 = smov 0   ;;  %s552_s15 = smov 0  }
   0x5   :  { %s554_s16 = smov 0   ;;  %s556_s17 = smov 0  }
   0x6 LB: > { %s331_s18 = sadd.s32 4294967295, %s522_s17   ;;  %s332_s19 = sadd.s32 4294967294, %s522_s17   ;;  %s522_s17 = sphi %s556_s17, %s19_s17   ;;  %s518_s16 = sphi %s554_s16, %s746_s16   ;;  %s514_s15 = sphi %s552_s15, %s745_s15   ;;  %s510_s14 = sphi %s550_s14, %s744_s14   ;;  %s506_s13 = sphi %s548_s13, %s743_s13   ;;  %s502_s12 = sphi %s546_s12, %s742_s12  }
   0x7   : > { %s31_s20 = sadd.s32 1, %s518_s16  ;;  %s40_s21 = sadd.s32 1, %s510_s14 }
   0x8   : > { %p33_p0 = scmp.ge.s32.totalorder %s31_s20, 2  ;;  %p47_p1 = scmp.ne.s32.totalorder %s510_s14, %s506_s13 }
   0x9   : > { %p48_p2 = scmp.eq.s32.totalorder %s522_s17, 0  ;;  %p53_p3 = scmp.ne.s32.totalorder %s506_s13, %s502_s12 }
   0xa   : > { %s748_s20 = smov (%p33_p0, %s31_s20), 0  ;;  %p54_p5 = scmp.eq.s32.totalorder %s331_s18, 0 }
   0xb   : > { %p587_p4 = por %p48_p2, %p47_p1  ;;  %s35_s23 = ssub.s32 %s518_s16, %s748_s20 }
   0xc   : > { %p121_p6 = scmp.eq.s32.totalorder %s331_s18, 1  ;;  %p38_p7 = scmp.eq.s32.totalorder %s35_s23, 0 }
   0xd   : > { %p593_p8 = por %p54_p5, %p53_p3  ;;  %p127_p10 = scmp.eq.s32.totalorder %s332_s19, 1 }
   0xe   : > { %p597_p9 = por %p121_p6, %p47_p1  ;;  %p358_p13 = scmp.lt.s32.totalorder %s522_s17, 2 }
   0xf   : > { %s602_s26 = scalar_select %p38_p7, %s510_s14, %s40_s21  }
  0x10   : > { %s734_s25 = scalar_select %p597_p9, 1, 0 }
  0x11   : > { %p604_p11 = por %p127_p10, %p53_p3  ;;  %s153_s28 = sand.u32 1, %s510_s14  }
  0x12   : > { %s335_s29 = sshll.u32 %s153_s28, 3  ;;  %s336_s30 = sshll.u32 %s518_s16, 7 }
  0x13   : > { %s735_s27 = scalar_select %p604_p11, 1, 0 }
  0x14   : > { %s615_s6 = scalar_lea.hbm %s727_s0, %s336_s30  ;;  %s157_s7 = scalar_lea.vmem [#allocation2], %s335_s29 }
  0x15   : > { %s165_s8 = sshll.u32 %s157_s7, 4  ;;  %p621_p0 = pnand %p358_p13, %p587_p4  ;;  %s617_s8 = int_to_ptr.vmem [resolvable:$true] %s165_s8 }
  0x16   : > { %s154_s10 = scalar_lea.sflag [#allocation3], %s153_s28  ;;  %s410_s11 = scalar_lea.hbm %s615_s6, 128 }
  0x17   : > { %p411_p3 = scmp.ne.s32.totalorder %s615_s6, %s410_s11  ;;  %p412_p5 = pneg %p621_p0 }
  0x18   : > { %s415_s21 = scalar_lea.hbm %s727_s0, 256  ;;  %p416_p4 = scmp.lt.u32.totalorder %s615_s6, %s727_s0 }
  0x19   : > { %p413_p6 = pnand %p412_p5, %p411_p3  ;;  %p417_p10 = scmp.lt.u32.totalorder %s415_s21, %s410_s11 }
  0x1a   : > { %p419_p12 = scmp.lt.u32.totalorder %s410_s11, %s615_s6 }
  0x1b   : > { %p414_p7 = pneg %p413_p6  ;;  %p418_p13 = por %p417_p10, %p416_p4 }
  0x1d   : > { %p420_p1 = por %p419_p12, %p418_p13 }
  0x1f   : > { %p421_p2 = pnand %p420_p1, %p414_p7 }
  0x21   : > { %424 = shalt.err (!%p421_p2)
}
  0x22   : > { %s425_s28 = scalar_lea.vmem %s617_s8, 128  ;;  %s524_s29 = smov [#allocation2]  }
  0x23   : > { %p426_p3 = scmp.ne.s32.totalorder %s617_s8, %s425_s28  ;;  %s430_s30 = sshll.u32 %s524_s29, 4  ;;  %s431_s30 = int_to_ptr.vmem [resolvable:$false] %s430_s30 }
  0x24   : > { %s432_s4 = scalar_lea.vmem %s431_s30, 256  ;;  %p433_p9 = scmp.lt.s32.totalorder %s617_s8, %s431_s30 }
  0x25   : > { %p428_p6 = pnand %p426_p3, %p412_p5  ;;  %p434_p4 = scmp.lt.s32.totalorder %s432_s4, %s425_s28 }
  0x27   : > { %p429_p11 = pneg %p428_p6  ;;  %p435_p10 = por %p434_p4, %p433_p9 }
  0x29   : > { %p436_p12 = pnand %p435_p10, %p429_p11 }
  0x2b   : > { %439 = shalt.err (!%p436_p12)
}
  0x2c   : > { %353 = dma.hbm_to_vmem [thread:$0]  (!%p621_p0), %s615_s6, 128, %s617_s8, %s154_s10  }
  0x2d   : > { %p737_p1 = scmp.lt.s32.totalorder %s522_s17, 3  ;;  %p738_p2 = scmp.ge.s32.totalorder %s522_s17, 1 }
  0x2f   : > { %p171_p5 = pnand %p738_p2, %p737_p1 }
  0x30   : > { %s657_s5 = sand.u32 (!%p171_p5), 1, %s506_s13  }
  0x31   : > { %174 = sbr.rel (%p171_p5) target bundleno = 385 (0x181), region = 32  ;;  %s338_s7 = sshll.u32 (!%p171_p5), %s657_s5, 3 }
  0x32   : > { %s177_s11 = scalar_lea.sflag (!%p171_p5), [#allocation3], %s657_s5  ;;  %s180_s18 = scalar_lea.vmem (!%p171_p5), [#allocation2], %s338_s7 }
  0x38   : > { %493 = dma.done.wait (%p593_p8), %s177_s11, 128  }
  0x39   : > { %495 = vsyncadd (%p593_p8), %s177_s11, 4294967168  ;;  %vm206_vm0 = vcmask 261120   ;;  %v203_v0 = vld [vmem:[%s180_s18] sm:$0xff]  ;;  %s343_s10 = sshll.u32 %s514_s15, 7  ;;  %s202_s19 = scalar_lea.vmem [#allocation5], %s338_s7 }
  0x3a   : > { %v207_v1 = vsel %vm206_vm0, %v203_v0, 0.0  ;;  %v340_v11 = vld [vmem:[%s728_s1] ss:$0 sm:$0xff]  ;;  %s251_s21 = sshll.u32 %s202_s19, 4  ;;  %s677_s28 = scalar_lea.hbm %s730_s3, %s343_s10  ;;  %s679_s21 = int_to_ptr.vmem [resolvable:$true] %s251_s21 }
  0x3b   : > { %208 = vadd.xlane.f32.xlu0 %v207_v1  ;;  %v341_v13 = vld [vmem:[%s729_s2] ss:$0 sm:$0xff]  ;;  %s237_s29 = scalar_lea.sflag [#allocation4], %s657_s5  ;;  %s440_s30 = scalar_lea.vmem %s679_s21, 128 }
  0x3c   : > { %p441_p8 = scmp.ne.s32.totalorder %s679_s21, %s440_s30  ;;  %p739_p9 = scmp.ne.s32.totalorder %s734_s25, 0 }
  0x3d   : > { %s525_s15 = smov [#allocation5]  }
  0x3e   : > { %p442_p11 = pnand %p441_p8, %p739_p9  ;;  %s444_s4 = sshll.u32 %s525_s15, 4  ;;  %s445_s4 = int_to_ptr.vmem [resolvable:$false] %s444_s4 }
  0x3f   : > { %s446_s7 = scalar_lea.vmem %s445_s4, 256  ;;  %p447_p7 = scmp.lt.s32.totalorder %s679_s21, %s445_s4 }
  0x40   : > { %p443_p0 = pneg %p442_p11  ;;  %p448_p13 = scmp.lt.s32.totalorder %s446_s7, %s440_s30 }
  0x42   : > { %p449_p3 = por %p448_p13, %p447_p7 }
  0x44   : > { %p450_p6 = pnand %p449_p3, %p443_p0 }
  0xc8   : > { %v209_v2 = vpop.xlane.xlu0 %208 }
  0xc9   : > { %v211_v3 = vmul.f32 0.03125, %v209_v2 }
  0xcb   : > { %v212_v4 = vsub.f32 %v203_v0, %v211_v3 }
  0xcd   : > { %v213_v5 = vmul.f32 %v212_v4, %v212_v4 }
  0xcf   : > { %v214_v6 = vsel %vm206_vm0, %v213_v5, 0.0 }
  0xd0   : > { %215 = vadd.xlane.f32.xlu0 %v214_v6 }
 0x15d   : > { %v216_v7 = vpop.xlane.xlu0 %215 }
 0x15e   : > { %v217_v8 = vmul.f32 0.03125, %v216_v7 }
 0x160   : > { %v218_v9 = vadd.f32 1e-12, %v217_v8 }
 0x162   : > { %408 = vrsqrt.f32 %v218_v9 }
 0x16c   : > { %v409_v10 = vpop.eup %408 }
 0x16d   : > { %v220_v12 = vmul.f32 %v409_v10, %v212_v4 }
 0x16f   : > { %v227_v14 = vmul.f32 %v340_v11, %v220_v12 }
 0x171   : > { %v234_v15 = vadd.f32 %v341_v13, %v227_v14 }
 0x173   : > { %235 = vst.msk [vmem:[%s202_s19] sm:$0xff] %vm206_vm0, %v234_v15 }
 0x174   : > { %453 = shalt.err (!%p450_p6)
}
 0x175   : > { %s454_s5 = scalar_lea.hbm %s677_s28, 128  ;;  %s458_s24 = scalar_lea.hbm %s730_s3, 256 }
 0x176   : > { %p455_p4 = scmp.ne.s32.totalorder %s677_s28, %s454_s5  ;;  %p459_p1 = scmp.lt.u32.totalorder %s677_s28, %s730_s3 }
 0x177   : > { %p460_p2 = scmp.lt.u32.totalorder %s458_s24, %s454_s5  ;;  %p462_p8 = scmp.lt.u32.totalorder %s454_s5, %s677_s28 }
 0x178   : > { %p456_p10 = pnand %p455_p4, %p739_p9 }
 0x179   : > { %p461_p5 = por %p460_p2, %p459_p1 }
 0x17a   : > { %p457_p12 = pneg %p456_p10 }
 0x17b   : > { %p463_p11 = por %p462_p8, %p461_p5 }
 0x17d   : > { %p464_p0 = pnand %p463_p11, %p457_p12 }
 0x17f   : > { %467 = shalt.err (!%p464_p0)
}
 0x180   : > { %348 = dma.vmem_to_hbm [thread:$0]  (%p739_p9), %s679_s21, 128, %s677_s28, %s237_s29  }
 0x181 PF: > { %s263_s9 = sand.u32 1, %s502_s12   ;;  %p740_p7 = scmp.ne.s32.totalorder %s735_s27, 0 }
 0x182   : > { %p741_p13 = scmp.ge.s32.totalorder %s522_s17, 2  ;;  %s264_s10 = scalar_lea.sflag [#allocation4], %s263_s9 }
 0x184   : > { %p355_p3 = pnand %p741_p13, %p740_p7 }
 0x186   : > { %497 = dma.done.wait (!%p355_p3), %s264_s10, 128  }
 0x187   : > { %499 = vsyncadd (!%p355_p3), %s264_s10, 4294967168  ;;  %s19_s17 = sadd.s32 1, %s522_s17   ;;  %s742_s12 = smov %s506_s13 }
 0x188   : > { %p16_p6 = scmp.ge.s32.totalorder %s19_s17, 4   ;;  %s743_s13 = smov %s510_s14 }
 0x189   : > { %s744_s14 = smov %s602_s26  ;;  %s745_s15 = smov %s518_s16 }
 0x18a   : > { %s746_s16 = smov %s748_s20  ;;  %18 = sbr.rel (!%p16_p6) target bundleno = 6 (0x6), region = 77 }
 0x191   :  { %269 = vsyncpa [#allocation3], 1 }
 0x192   :  { %271 = vsyncpa [#allocation3 + $0x1], 1 }
 0x193   :  { %272 = vsyncpa [#allocation4], 1 }
 0x194   :  { %274 = vsyncpa [#allocation4 + $0x1], 1 }

</bundles_post_ra>
